<compile_context>
chip_gen: v7x
topology: tpu7x:2x2x1
jax: 0.10.0
libtpu: 0.0.40
codegen_flags: <defaults>
</compile_context>

<pallas_src>
import jax
import jax.numpy as jnp
from jax import lax
from jax.experimental import pallas as pl
from jax.experimental.pallas import tpu as pltpu

KSIZE = 5
PAD = 2


def resnet1d_kernel(x_ref, w1_ref, b1_ref, w2_ref, b2_ref, wfc_ref, bfc_ref,
                    out_ref):
    # x_ref  : (B, L, Cin)      channels-last input, UNPADDED
    # w1_ref : (K*Cin, Cmid)    conv1 weight, im2col layout (row index = k*Cin + c)
    # b1_ref : (1, Cmid)
    # w2_ref : (K*Cmid, Cmid)   conv2 weight, im2col layout
    # b2_ref : (1, Cmid)
    # wfc_ref: (Cmid, 2)
    # bfc_ref: (1, 2)
    # out_ref: (B, 2)
    B, L, Cin = x_ref.shape
    Cmid = w1_ref.shape[1]

    def im2col(a, c):
        # a: (B, L, c). Zero-pad along L (in values, no scratch round trip),
        # concatenate the KSIZE shifted windows along the lane/contraction axis,
        # then flatten batch into the matmul M dim -> (B*L, KSIZE*c).
        z = jnp.zeros((B, PAD, c), jnp.float32)
        apad = jnp.concatenate([z, a, z], axis=1)                  # (B, L+2*PAD, c)
        taps = jnp.concatenate(
            [apad[:, k:k + L, :] for k in range(KSIZE)], axis=-1)  # (B, L, K*c)
        return taps.reshape(B * L, KSIZE * c)

    x = x_ref[...].astype(jnp.float32)

    # ---- conv1: single MXU matmul (M=B*L, K=KSIZE*Cin) + bias + ReLU ----
    h1 = jnp.dot(im2col(x, Cin), w1_ref[...],
                 preferred_element_type=jnp.float32) + b1_ref[...]
    h1 = jnp.maximum(h1, 0.0)                                       # (B*L, Cmid)

    # ---- conv2: single MXU matmul (K=KSIZE*Cmid=160) + bias + residual + ReLU ----
    h2 = jnp.dot(im2col(h1.reshape(B, L, Cmid), Cmid), w2_ref[...],
                 preferred_element_type=jnp.float32) + b2_ref[...]
    h2 = jnp.maximum(h2 + h1, 0.0)                                  # (B*L, Cmid)

    # ---- adaptive avg pool over L + one batched FC matmul + one store ----
    pooled = jnp.sum(h2.reshape(B, L, Cmid), axis=1) * (1.0 / L)    # (B, Cmid)
    out_ref[...] = (jnp.dot(pooled, wfc_ref[...],
                            preferred_element_type=jnp.float32) + bfc_ref[...])


def _full_spec(shape):
    nd = len(shape)
    return pl.BlockSpec(shape, lambda i, _nd=nd: (0,) * _nd)


@jax.jit
def resnet1d_forward(x, params):
    """x: (B, 2, L) float32, matching PyTorch NCL. Returns (B, 2)."""
    w1, b1, w2, b2, wfc, bfc = params
    B, Cin, L = x.shape
    Cmid = w1.shape[0]

    # Remaining glue (fused into this jit): NCL->NLC transpose of x and the
    # one-time weight repacking to im2col layout. Padding lives in the kernel.
    # TODO(synk): fold the NLC transpose into the kernel (pltpu.einshape) if x
    # ever becomes large enough for the extra fusion to matter.
    x_clast = jnp.transpose(x, (0, 2, 1)).astype(jnp.float32)            # (B, L, Cin)
    # torch conv weight (Cout, Cin, K) -> (K, Cin, Cout) -> (K*Cin, Cout)
    w1k = jnp.transpose(w1, (2, 1, 0)).reshape(KSIZE * Cin, Cmid).astype(jnp.float32)
    w2k = jnp.transpose(w2, (2, 1, 0)).reshape(KSIZE * Cmid, Cmid).astype(jnp.float32)
    wfc_t = jnp.transpose(wfc).astype(jnp.float32)                       # (Cmid, 2)
    b1r = b1.reshape(1, Cmid).astype(jnp.float32)
    b2r = b2.reshape(1, Cmid).astype(jnp.float32)
    bfcr = bfc.reshape(1, 2).astype(jnp.float32)

    # Footprint is a few KiB, so a single grid step with full-array blocks is the
    # right shape for all of v5e/v6e/v7x. If B or L grow, switch to grid=(B,) (or
    # L tiles in multiples of 8) with dimension_semantics=("parallel",) so v7x
    # can shard across its 2 TensorCores, and re-derive tiles against 64 MiB VMEM.
    out = pl.pallas_call(
        resnet1d_kernel,
        out_shape=jax.ShapeDtypeStruct((B, 2), jnp.float32),
        grid=(1,),
        in_specs=[
            _full_spec(x_clast.shape),
            _full_spec(w1k.shape),
            _full_spec(b1r.shape),
            _full_spec(w2k.shape),
            _full_spec(b2r.shape),
            _full_spec(wfc_t.shape),
            _full_spec(bfcr.shape),
        ],
        out_specs=_full_spec((B, 2)),
        compiler_params=pltpu.CompilerParams(
            dimension_semantics=("arbitrary",)),
    )(x_clast, w1k, b1r, w2k, b2r, wfc_t, bfcr)
    return out


def init_params(key):
    """Deterministic synthetic parameters with the module's shapes."""
    ks = jax.random.split(key, 6)
    w1 = 0.1 * jax.random.normal(ks[0], (32, 2, 5), jnp.float32)   # Conv1d(2,32,5)
    b1 = 0.1 * jax.random.normal(ks[1], (32,), jnp.float32)
    w2 = 0.1 * jax.random.normal(ks[2], (32, 32, 5), jnp.float32)  # Conv1d(32,32,5)
    b2 = 0.1 * jax.random.normal(ks[3], (32,), jnp.float32)
    wfc = 0.1 * jax.random.normal(ks[4], (2, 32), jnp.float32)     # Linear(32,2)
    bfc = 0.1 * jax.random.normal(ks[5], (2,), jnp.float32)
    return (w1, b1, w2, b2, wfc, bfc)


def ref_forward(x, params):
    """Pure-JAX reference matching the PyTorch forward exactly."""
    w1, b1, w2, b2, wfc, bfc = params
    dn = ("NCH", "OIH", "NCH")
    h1 = lax.conv_general_dilated(x, w1, (1,), [(PAD, PAD)],
                                  dimension_numbers=dn) + b1[None, :, None]
    h1 = jnp.maximum(h1, 0.0)
    h2 = lax.conv_general_dilated(h1, w2, (1,), [(PAD, PAD)],
                                  dimension_numbers=dn) + b2[None, :, None]
    h2 = jnp.maximum(h2 + h1, 0.0)
    pooled = jnp.mean(h2, axis=-1)          # AdaptiveAvgPool1d(1).squeeze(-1)
    return pooled @ wfc.T + bfc


if __name__ == "__main__":
    key = jax.random.PRNGKey(0)
    kx, kp = jax.random.split(key)
    B, Cin, L = 2, 2, 16
    x = jax.random.normal(kx, (B, Cin, L), jnp.float32)
    params = init_params(kp)

    out = resnet1d_forward(x, params)
    out = jax.block_until_ready(out)

    expected = ref_forward(x, params)
    assert out.shape == (B, 2)
    assert jnp.allclose(out, expected, atol=1e-4, rtol=1e-4), (out, expected)
    print("KERNEL_OK")
</pallas_src>

<mosaic_0001>
module attributes {stable_mosaic.version = 11 : i64} {
  func.func @resnet1d_kernel(%arg0: i32, %arg1: memref<2x16x2xf32, #tpu.memory_space<vmem>>, %arg2: memref<10x32xf32, #tpu.memory_space<vmem>>, %arg3: memref<1x32xf32, #tpu.memory_space<vmem>>, %arg4: memref<160x32xf32, #tpu.memory_space<vmem>>, %arg5: memref<1x32xf32, #tpu.memory_space<vmem>>, %arg6: memref<32x2xf32, #tpu.memory_space<vmem>>, %arg7: memref<1x2xf32, #tpu.memory_space<vmem>>, %arg8: memref<2x2xf32, #tpu.memory_space<vmem>>) attributes {dimension_semantics = [#tpu.dimension_semantics<arbitrary>], iteration_bounds = array<i64: 1>, scalar_prefetch = 0 : i64, scratch_operands = 0 : i64, tpu.core_type = #tpu.core_type<tc>, window_params = [{pipeline_mode = #tpu.pipeline_mode<synchronous>, transform_indices = @transform_0, window_bounds = array<i64: 2, 16, 2>}, {pipeline_mode = #tpu.pipeline_mode<synchronous>, transform_indices = @transform_1, window_bounds = array<i64: 10, 32>}, {pipeline_mode = #tpu.pipeline_mode<synchronous>, transform_indices = @transform_2, window_bounds = array<i64: 1, 32>}, {pipeline_mode = #tpu.pipeline_mode<synchronous>, transform_indices = @transform_3, window_bounds = array<i64: 160, 32>}, {pipeline_mode = #tpu.pipeline_mode<synchronous>, transform_indices = @transform_4, window_bounds = array<i64: 1, 32>}, {pipeline_mode = #tpu.pipeline_mode<synchronous>, transform_indices = @transform_5, window_bounds = array<i64: 32, 2>}, {pipeline_mode = #tpu.pipeline_mode<synchronous>, transform_indices = @transform_6, window_bounds = array<i64: 1, 2>}, {pipeline_mode = #tpu.pipeline_mode<synchronous>, transform_indices = @transform_7, window_bounds = array<i64: 2, 2>}]} {
    %c0 = arith.constant 0 : index
    %c0_0 = arith.constant 0 : index
    %c0_1 = arith.constant 0 : index
    %0 = vector.load %arg1[%c0, %c0_0, %c0_1] : memref<2x16x2xf32, #tpu.memory_space<vmem>>, vector<2x16x2xf32>
    %cst = arith.constant 0.000000e+00 : f32
    %1 = vector.broadcast %cst : f32 to vector<2x2x2xf32>
    %2 = tpu.concatenate %1, %0, %1 in 1 : vector<2x2x2xf32>, vector<2x16x2xf32>, vector<2x2x2xf32> -> vector<2x20x2xf32>
    %3 = vector.extract_strided_slice %2 {offsets = [0, 0, 0], sizes = [2, 16, 2], strides = [1, 1, 1]} : vector<2x20x2xf32> to vector<2x16x2xf32>
    %4 = vector.extract_strided_slice %2 {offsets = [0, 1, 0], sizes = [2, 16, 2], strides = [1, 1, 1]} : vector<2x20x2xf32> to vector<2x16x2xf32>
    %5 = vector.extract_strided_slice %2 {offsets = [0, 2, 0], sizes = [2, 16, 2], strides = [1, 1, 1]} : vector<2x20x2xf32> to vector<2x16x2xf32>
    %6 = vector.extract_strided_slice %2 {offsets = [0, 3, 0], sizes = [2, 16, 2], strides = [1, 1, 1]} : vector<2x20x2xf32> to vector<2x16x2xf32>
    %7 = vector.extract_strided_slice %2 {offsets = [0, 4, 0], sizes = [2, 16, 2], strides = [1, 1, 1]} : vector<2x20x2xf32> to vector<2x16x2xf32>
    %8 = tpu.concatenate %3, %4, %5, %6, %7 in 2 : vector<2x16x2xf32>, vector<2x16x2xf32>, vector<2x16x2xf32>, vector<2x16x2xf32>, vector<2x16x2xf32> -> vector<2x16x10xf32>
    %9 = vector.shape_cast %8 : vector<2x16x10xf32> to vector<32x10xf32>
    %c0_2 = arith.constant 0 : index
    %c0_3 = arith.constant 0 : index
    %10 = vector.load %arg2[%c0_2, %c0_3] : memref<10x32xf32, #tpu.memory_space<vmem>>, vector<10x32xf32>
    %cst_4 = arith.constant dense<0.000000e+00> : vector<32x32xf32>
    %11 = tpu.matmul %9, %10, %cst_4 {dimension_numbers = #tpu.dot_dimension_numbers<[1], [0], [0], [1], [0, 0, 1, 1], [], []>} : vector<32x10xf32>, vector<10x32xf32>, vector<32x32xf32> -> vector<32x32xf32>
    %c0_5 = arith.constant 0 : index
    %c0_6 = arith.constant 0 : index
    %12 = vector.load %arg3[%c0_5, %c0_6] : memref<1x32xf32, #tpu.memory_space<vmem>>, vector<1x32xf32>
    %13 = vector.broadcast %12 : vector<1x32xf32> to vector<32x32xf32>
    %14 = arith.addf %11, %13 : vector<32x32xf32>
    %cst_7 = arith.constant 0.000000e+00 : f32
    %15 = vector.broadcast %cst_7 : f32 to vector<32x32xf32>
    %16 = arith.maximumf %14, %15 : vector<32x32xf32>
    %17 = vector.shape_cast %16 : vector<32x32xf32> to vector<2x16x32xf32>
    %cst_8 = arith.constant 0.000000e+00 : f32
    %18 = vector.broadcast %cst_8 : f32 to vector<2x2x32xf32>
    %19 = tpu.concatenate %18, %17, %18 in 1 : vector<2x2x32xf32>, vector<2x16x32xf32>, vector<2x2x32xf32> -> vector<2x20x32xf32>
    %20 = vector.extract_strided_slice %19 {offsets = [0, 0, 0], sizes = [2, 16, 32], strides = [1, 1, 1]} : vector<2x20x32xf32> to vector<2x16x32xf32>
    %21 = vector.extract_strided_slice %19 {offsets = [0, 1, 0], sizes = [2, 16, 32], strides = [1, 1, 1]} : vector<2x20x32xf32> to vector<2x16x32xf32>
    %22 = vector.extract_strided_slice %19 {offsets = [0, 2, 0], sizes = [2, 16, 32], strides = [1, 1, 1]} : vector<2x20x32xf32> to vector<2x16x32xf32>
    %23 = vector.extract_strided_slice %19 {offsets = [0, 3, 0], sizes = [2, 16, 32], strides = [1, 1, 1]} : vector<2x20x32xf32> to vector<2x16x32xf32>
    %24 = vector.extract_strided_slice %19 {offsets = [0, 4, 0], sizes = [2, 16, 32], strides = [1, 1, 1]} : vector<2x20x32xf32> to vector<2x16x32xf32>
    %25 = tpu.concatenate %20, %21, %22, %23, %24 in 2 : vector<2x16x32xf32>, vector<2x16x32xf32>, vector<2x16x32xf32>, vector<2x16x32xf32>, vector<2x16x32xf32> -> vector<2x16x160xf32>
    %26 = vector.shape_cast %25 : vector<2x16x160xf32> to vector<32x160xf32>
    %c0_9 = arith.constant 0 : index
    %c0_10 = arith.constant 0 : index
    %27 = vector.load %arg4[%c0_9, %c0_10] : memref<160x32xf32, #tpu.memory_space<vmem>>, vector<160x32xf32>
    %cst_11 = arith.constant dense<0.000000e+00> : vector<32x32xf32>
    %28 = tpu.matmul %26, %27, %cst_11 {dimension_numbers = #tpu.dot_dimension_numbers<[1], [0], [0], [1], [0, 0, 1, 1], [], []>} : vector<32x160xf32>, vector<160x32xf32>, vector<32x32xf32> -> vector<32x32xf32>
    %c0_12 = arith.constant 0 : index
    %c0_13 = arith.constant 0 : index
    %29 = vector.load %arg5[%c0_12, %c0_13] : memref<1x32xf32, #tpu.memory_space<vmem>>, vector<1x32xf32>
    %30 = vector.broadcast %29 : vector<1x32xf32> to vector<32x32xf32>
    %31 = arith.addf %28, %30 : vector<32x32xf32>
    %32 = arith.addf %31, %16 : vector<32x32xf32>
    %cst_14 = arith.constant 0.000000e+00 : f32
    %33 = vector.broadcast %cst_14 : f32 to vector<32x32xf32>
    %34 = arith.maximumf %32, %33 : vector<32x32xf32>
    %35 = vector.shape_cast %34 : vector<32x32xf32> to vector<2x16x32xf32>
    %cst_15 = arith.constant dense<0.000000e+00> : vector<2x32xf32>
    %36 = vector.multi_reduction <add>, %35, %cst_15 [1] : vector<2x16x32xf32> to vector<2x32xf32>
    %cst_16 = arith.constant 6.250000e-02 : f32
    %37 = vector.broadcast %cst_16 : f32 to vector<2x32xf32>
    %38 = arith.mulf %36, %37 : vector<2x32xf32>
    %c0_17 = arith.constant 0 : index
    %c0_18 = arith.constant 0 : index
    %39 = vector.load %arg6[%c0_17, %c0_18] : memref<32x2xf32, #tpu.memory_space<vmem>>, vector<32x2xf32>
    %cst_19 = arith.constant dense<0.000000e+00> : vector<2x2xf32>
    %40 = tpu.matmul %38, %39, %cst_19 {dimension_numbers = #tpu.dot_dimension_numbers<[1], [0], [0], [1], [0, 0, 1, 1], [], []>} : vector<2x32xf32>, vector<32x2xf32>, vector<2x2xf32> -> vector<2x2xf32>
    %c0_20 = arith.constant 0 : index
    %c0_21 = arith.constant 0 : index
    %41 = vector.load %arg7[%c0_20, %c0_21] : memref<1x2xf32, #tpu.memory_space<vmem>>, vector<1x2xf32>
    %42 = vector.broadcast %41 : vector<1x2xf32> to vector<2x2xf32>
    %43 = arith.addf %40, %42 : vector<2x2xf32>
    %c0_22 = arith.constant 0 : index
    %c0_23 = arith.constant 0 : index
    %44 = vector.load %arg8[%c0_22, %c0_23] : memref<2x2xf32, #tpu.memory_space<vmem>>, vector<2x2xf32>
    tpu.vector_store %arg8[%c0_22, %c0_23], %43 {strides = array<i32>} : memref<2x2xf32, #tpu.memory_space<vmem>>, vector<2x2xf32>,
    return
  }
  func.func @transform_0(%arg0: i32) -> (i32, i32, i32) {
    %c0_i32 = arith.constant 0 : i32
    %c0_i32_0 = arith.constant 0 : i32
    %c0_i32_1 = arith.constant 0 : i32
    %c0_i32_2 = arith.constant 0 : i32
    return %c0_i32, %c0_i32_0, %c0_i32_1 : i32, i32, i32
  }
  func.func @transform_1(%arg0: i32) -> (i32, i32) {
    %c0_i32 = arith.constant 0 : i32
    %c0_i32_0 = arith.constant 0 : i32
    %c0_i32_1 = arith.constant 0 : i32
    return %c0_i32, %c0_i32_0 : i32, i32
  }
  func.func @transform_2(%arg0: i32) -> (i32, i32) {
    %c0_i32 = arith.constant 0 : i32
    %c0_i32_0 = arith.constant 0 : i32
    %c0_i32_1 = arith.constant 0 : i32
    return %c0_i32, %c0_i32_0 : i32, i32
  }
  func.func @transform_3(%arg0: i32) -> (i32, i32) {
    %c0_i32 = arith.constant 0 : i32
    %c0_i32_0 = arith.constant 0 : i32
    %c0_i32_1 = arith.constant 0 : i32
    return %c0_i32, %c0_i32_0 : i32, i32
  }
  func.func @transform_4(%arg0: i32) -> (i32, i32) {
    %c0_i32 = arith.constant 0 : i32
    %c0_i32_0 = arith.constant 0 : i32
    %c0_i32_1 = arith.constant 0 : i32
    return %c0_i32, %c0_i32_0 : i32, i32
  }
  func.func @transform_5(%arg0: i32) -> (i32, i32) {
    %c0_i32 = arith.constant 0 : i32
    %c0_i32_0 = arith.constant 0 : i32
    %c0_i32_1 = arith.constant 0 : i32
    return %c0_i32, %c0_i32_0 : i32, i32
  }
  func.func @transform_6(%arg0: i32) -> (i32, i32) {
    %c0_i32 = arith.constant 0 : i32
    %c0_i32_0 = arith.constant 0 : i32
    %c0_i32_1 = arith.constant 0 : i32
    return %c0_i32, %c0_i32_0 : i32, i32
  }
  func.func @transform_7(%arg0: i32) -> (i32, i32) {
    %c0_i32 = arith.constant 0 : i32
    %c0_i32_0 = arith.constant 0 : i32
    %c0_i32_1 = arith.constant 0 : i32
    return %c0_i32, %c0_i32_0 : i32, i32
  }
}

</mosaic_0001>

<bundles_post_ra>
// kernel: resnet1d_forward.1
= control target key start
LH: loop header
LB: loop body
LE: loop exit
PB: predicated region body
PF: predicated region fallthrough
CT: control target
= control target key end

     0   :  { %vm35_vm0 = vcmask 1041408   ;;  %vm79_vm1 = vcmask 1045504   ;;  %vm56_vm2 = vcmask 1046528   ;;  %s1135_s0 = inlined_call_operand.vmem [shape: f32[2,16,2], index: 0, kind: input, shape index: {}]   ;;  %s1136_s1 = inlined_call_operand.vmem [shape: f32[10,32], index: 1, kind: input, shape index: {}]   ;;  %s1137_s2 = inlined_call_operand.vmem [shape: f32[1,32], index: 2, kind: input, shape index: {}]   ;;  %s1138_s3 = inlined_call_operand.vmem [shape: f32[160,32], index: 3, kind: input, shape index: {}]   ;;  %s1139_s4 = inlined_call_operand.vmem [shape: f32[1,32], index: 4, kind: input, shape index: {}]   ;;  %s1140_s5 = inlined_call_operand.vmem [shape: f32[32,2], index: 5, kind: input, shape index: {}]   ;;  %s1141_s6 = inlined_call_operand.vmem [shape: f32[1,2], index: 6, kind: input, shape index: {}]   ;;  %s1142_s7 = inlined_call_operand.hbm [shape: f32[2,2], index: 7, kind: output, shape index: {}]  }
   0x1   :  { %v27_v0 = vld [vmem:[%s1135_s0] sm:$0xff]  ;;  %v28_v1 = vld [vmem:[%s1135_s0 + $0x8] sm:$0xff] }
   0x2   :  { %v36_v2 = vrot.slane %v27_v0, 6  ;;  %v37_v3 = vrot.slane %v28_v1, 6 }
   0x4   :  { %v845_v4 = vsel %vm35_vm0, %v36_v2, %v37_v3  ;;  %v848_v5 = vsel %vm35_vm0, 0.0, %v36_v2  ;;  %v50_v6 = vsel %vm35_vm0, %v37_v3, 0.0 }
   0x5   :  { %v80_v7 = vrot.slane %v848_v5, 2  ;;  %v81_v8 = vrot.slane %v845_v4, 2  ;;  %v57_v9 = vrot.slane %v848_v5, 1  ;;  %v58_v10 = vrot.slane %v845_v4, 1 }
   0x6   :  { %12 = vsyncpa [#allocation3], 0  ;;  %v83_v11 = vrot.slane %v50_v6, 2  ;;  %v60_v12 = vrot.slane %v50_v6, 1  ;;  %v29_v15 = vld [vmem:[%s1135_s0 + $0x10] sm:$0xff]  ;;  %v30_v16 = vld [vmem:[%s1135_s0 + $0x18] sm:$0xff] }
   0x7   :  { %v82_v13 = vsel %vm79_vm1, %v80_v7, %v81_v8  ;;  %v59_v14 = vsel %vm56_vm2, %v57_v9, %v58_v10  ;;  %s786_s9 = smov 4   ;;  %s787_s10 = smov 2   ;;  %v104_v17 = vrot.slane %v845_v4, 3  ;;  %v106_v20 = vrot.slane %v50_v6, 3  ;;  %v168_v29 = vld [vmem:[%s1136_s1] sm:$0xff] }
   0x8   :  { %90 = vrot.lane.b32.xlu1 %v82_v13, %s786_s9  ;;  %67 = vrot.lane.b32.xlu0 %v59_v14, %s787_s10  ;;  %v84_v18 = vsel %vm79_vm1, %v81_v8, %v83_v11  ;;  %v61_v19 = vsel %vm56_vm2, %v58_v10, %v60_v12  ;;  %v103_v21 = vrot.slane %v848_v5, 3  ;;  %vm102_vm3 = vcmask 1044480   ;;  %v169_v30 = vld [vmem:[%s1136_s1 + $0x8] sm:$0x3]  ;;  %s788_s14 = smov 6   ;;  %s790_s1 = smov 8  }
   0x9   :  { %v39_v22 = vrot.slane %v29_v15, 6  ;;  %v40_v23 = vrot.slane %v30_v16, 6  ;;  %v127_v24 = vrot.slane %v845_v4, 4  ;;  %v129_v25 = vrot.slane %v50_v6, 4  ;;  %s793_s8 = smov 32   ;;  %s797_s18 = smov [#allocation2]  }
   0xa   :  { %v107_v26 = vsel %vm102_vm3, %v104_v17, %v106_v20  ;;  %v105_v27 = vsel %vm102_vm3, %v103_v21, %v104_v17  ;;  %vm125_vm4 = vcmask 1043456   ;;  %v126_v28 = vrot.slane %v848_v5, 4  ;;  %s640_s19 = sshll.u32 %s797_s18, 4  ;;  %s641_s19 = int_to_ptr.vmem [resolvable:$true] %s640_s19 }
   0xb   :  { %v882_v31 = vsel %vm35_vm0, %v39_v22, %v40_v23  ;;  %v51_v32 = vsel %vm35_vm0, %v40_v23, 0.0  ;;  %v886_v33 = vsel %vm35_vm0, 0.0, %v39_v22  ;;  %v130_v34 = vsel %vm125_vm4, %v127_v24, %v129_v25  ;;  %v397_v25 = vld [vmem:[%s1138_s3] sm:$0xff]  ;;  %s762_s20 = scalar_lea.vmem %s641_s19, 32  ;;  %p767_p1 = scmp.lt.s32.totalorder %s641_s19, %s641_s19 }
   0xc   :  { %92 = vrot.lane.b32.xlu1 %v84_v18, %s786_s9  ;;  %69 = vrot.lane.b32.xlu0 %v61_v19, %s787_s10  ;;  %v693_v35 = vpack.c.bf16 %v169_v30, %v168_v29  ;;  %v128_v36 = vsel %vm125_vm4, %v126_v28, %v127_v24  ;;  %v63_v37 = vrot.slane %v882_v31, 1  ;;  %v65_v38 = vrot.slane %v51_v32, 1  ;;  %v400_v30 = vld [vmem:[%s1138_s3 + $0x18] sm:$0xff]  ;;  %p763_p0 = scmp.ne.s32.totalorder %s641_s19, %s762_s20  ;;  %p768_p2 = scmp.lt.s32.totalorder %s762_s20, %s762_s20 }
   0xd   :  { %v62_v39 = vrot.slane %v886_v33, 1  ;;  %vm789_vm5 = vmmov 1   ;;  %v85_v40 = vrot.slane %v886_v33, 2  ;;  %v86_v43 = vrot.slane %v882_v31, 2 }
   0xe   :  { %vm694_vm6 = vmpackc.low %vm35_vm0, %vm789_vm5  ;;  %v66_v41 = vsel %vm56_vm2, %v63_v37, %v65_v38  ;;  %v88_v44 = vrot.slane %v51_v32, 2  ;;  %v108_v45 = vrot.slane %v886_v33, 3  ;;  %v109_v48 = vrot.slane %v882_v31, 3  ;;  %v405_v38 = vld [vmem:[%s1138_s3 + $0x40] sm:$0xff]  ;;  %p769_p3 = por %p768_p2, %p767_p1 }
   0xf   :  { %695 = vmatprep.subr.msk.bf16.mxu0 %vm694_vm6, %v693_v35  ;;  %v64_v42 = vsel %vm56_vm2, %v62_v39, %v63_v37  ;;  %v87_v47 = vsel %vm79_vm1, %v85_v40, %v86_v43  ;;  %v111_v49 = vrot.slane %v51_v32, 3  ;;  %v131_v50 = vrot.slane %v886_v33, 4  ;;  %v406_v39 = vld [vmem:[%s1138_s3 + $0x48] sm:$0xff] }
  0x10   :  { %115 = vrot.lane.b32.xlu1 %v107_v26, %s788_s14  ;;  %113 = vrot.lane.b32.xlu0 %v105_v27, %s788_s14  ;;  %v89_v46 = vsel %vm79_vm1, %v86_v43, %v88_v44  ;;  %v110_v52 = vsel %vm102_vm3, %v108_v45, %v109_v48  ;;  %v132_v53 = vrot.slane %v882_v31, 4  ;;  %v134_v54 = vrot.slane %v51_v32, 4  ;;  %v398_v26 = vld [vmem:[%s1138_s3 + $0x8] sm:$0xff]  ;;  %v399_v27 = vld [vmem:[%s1138_s3 + $0x10] sm:$0xff]  ;;  %p770_p4 = pnand %p769_p3, %p763_p0 }
  0x11   :  { %698 = vmatpush3.bf16.msk.msra.mxu0 %vm694_vm6, %v693_v35  ;;  %v112_v51 = vsel %vm102_vm3, %v109_v48, %v111_v49  ;;  %vm148_vm7 = vcmask 15360   ;;  %vm153_vm8 = vcmask 31744   ;;  %vm158_vm9 = vcmask 48128   ;;  %v401_v32 = vld [vmem:[%s1138_s3 + $0x20] sm:$0xff]  ;;  %v403_v35 = vld [vmem:[%s1138_s3 + $0x30] sm:$0xff]  ;;  %v410_v45 = vld [vmem:[%s1138_s3 + $0x68] sm:$0xff] }
  0x12   :  { %v135_v55 = vsel %vm125_vm4, %v132_v53, %v134_v54  ;;  %v133_v56 = vsel %vm125_vm4, %v131_v50, %v132_v53  ;;  %vm163_vm10 = vcmask 64512   ;;  %vm177_vm11 = vcmask 80896   ;;  %v409_v44 = vld [vmem:[%s1138_s3 + $0x60] sm:$0xff]  ;;  %v412_v48 = vld [vmem:[%s1138_s3 + $0x78] sm:$0xff]  ;;  %v414_v53 = vld [vmem:[%s1138_s3 + $0x88] sm:$0xff] }
  0x13   :  { %v791_v28 = vmov 0.0|0.0   ;;  %v700_v29 = vpack.c.bf16 %v398_v26, %v397_v25  ;;  %v712_v40 = vpack.c.bf16 %v406_v39, %v405_v38  ;;  %v648_v50 = vld [vmem:[%s1137_s2] ss:$0 sm:$0xff]  ;;  %vm382_vm12 = vcmask 261120  }
  0x14   :  { %138 = vrot.lane.b32.xlu1 %v130_v34, %s790_s1  ;;  %136 = vrot.lane.b32.xlu0 %v128_v36, %s790_s1  ;;  %v404_v36 = vld [vmem:[%s1138_s3 + $0x38] sm:$0xff]  ;;  %vm387_vm13 = vcmask 523264   ;;  %vm392_vm14 = vcmask 785408   ;;  %vm795_vm15 = vmmov 0  }
  0x15   :  { %699 = vmatprep.subr.bf16.mxu1 %v791_v28  ;;  %729 = vmatprep.subr.bf16.mxu0 %v791_v28  ;;  %v709_v37 = vpack.c.bf16 %v404_v36, %v403_v35 }
  0x16   :  { %701 = vmatpush1.bf16.msra.mxu1 %v700_v29 }
  0x17   :  { %702 = vmatprep.subr.bf16.mxu1 %v791_v28 }
  0x18   :  { %73 = vrot.lane.b32.xlu1 %v66_v41, %s787_s10  ;;  %71 = vrot.lane.b32.xlu0 %v64_v42, %s787_s10  ;;  %v407_v41 = vld [vmem:[%s1138_s3 + $0x50] sm:$0xff]  ;;  %v408_v42 = vld [vmem:[%s1138_s3 + $0x58] sm:$0xff] }
  0x19   :  { %v715_v43 = vpack.c.bf16 %v408_v42, %v407_v41 }
  0x1c   :  { %96 = vrot.lane.b32.xlu1 %v89_v46, %s786_s9  ;;  %94 = vrot.lane.b32.xlu0 %v87_v47, %s786_s9  ;;  %v718_v46 = vpack.c.bf16 %v410_v45, %v409_v44  ;;  %v411_v47 = vld [vmem:[%s1138_s3 + $0x70] sm:$0xff]  ;;  %s794_s9 = smov 96  }
  0x1d   :  { %v721_v49 = vpack.c.bf16 %v412_v48, %v411_v47 }
  0x20   :  { %119 = vrot.lane.b32.xlu1 %v112_v51, %s788_s14  ;;  %117 = vrot.lane.b32.xlu0 %v110_v52, %s788_s14  ;;  %v413_v52 = vld [vmem:[%s1138_s3 + $0x80] sm:$0xff] }
  0x24   :  { %142 = vrot.lane.b32.xlu1 %v135_v55, %s790_s1  ;;  %140 = vrot.lane.b32.xlu0 %v133_v56, %s790_s1  ;;  %v724_v56 = vpack.c.bf16 %v414_v53, %v413_v52 }
  0x7a   :  { %v91_v57 = vpop.permute.xlu1 %90  ;;  %v68_v58 = vpop.permute.xlu0 %67 }
  0x7b   :  { %v149_v61 = vsel %vm148_vm7, %v848_v5, %v68_v58 }
  0x7c   :  { %v154_v2 = vsel %vm153_vm8, %v149_v61, %v91_v57  ;;  %v416_v61 = vld [vmem:[%s1138_s3 + $0x98] sm:$0xff] }
  0x7e   :  { %v93_v59 = vpop.permute.xlu1 %92  ;;  %v70_v60 = vpop.permute.xlu0 %69 }
  0x7f   :  { %v150_v62 = vsel %vm148_vm7, %v845_v4, %v70_v60  ;;  %v415_v60 = vld [vmem:[%s1138_s3 + $0x90] sm:$0xff] }
  0x80   :  { %v155_v1 = vsel %vm153_vm8, %v150_v62, %v93_v59 }
  0x82   :  { %v116_v63 = vpop.permute.xlu1 %115  ;;  %v114_v0 = vpop.permute.xlu0 %113 }
  0x83   :  { %v160_v3 = vsel %vm158_vm9, %v155_v1, %v116_v63  ;;  %v159_v6 = vsel %vm158_vm9, %v154_v2, %v114_v0  ;;  %v727_v63 = vpack.c.bf16 %v416_v61, %v415_v60 }
  0x86   :  { %v139_v7 = vpop.permute.xlu1 %138  ;;  %v137_v8 = vpop.permute.xlu0 %136 }
  0x87   :  { %v165_v5 = vsel %vm163_vm10, %v160_v3, %v139_v7  ;;  %v164_v4 = vsel %vm163_vm10, %v159_v6, %v137_v8 }
  0x88   :  { %676 = vmatprep.mubr.msk.f32.mxu0 %vm177_vm11, %v164_v4 }
  0x89   :  { %677 = vmatmul.mubr.msk.f32.vlgmr.msra.gmra.mrb[0].mxu0 %vm177_vm11, %v165_v5 }
  0x8a   :  { %v74_v9 = vpop.permute.xlu1 %73  ;;  %v72_v10 = vpop.permute.xlu0 %71 }
  0x8b   :  { %v152_v15 = vsel %vm148_vm7, %v882_v31, %v74_v9  ;;  %v151_v16 = vsel %vm148_vm7, %v886_v33, %v72_v10  ;;  %v703_v31 = vpack.c.bf16 %v400_v30, %v399_v27  ;;  %v402_v33 = vld [vmem:[%s1138_s3 + $0x28] sm:$0xff]  ;;  %s792_s3 = smov 64  }
  0x8c   :  { %v706_v34 = vpack.c.bf16 %v402_v33, %v401_v32 }
  0x8d   :  { %704 = vmatpush1.bf16.msra.mxu1 %v703_v31 }
  0x8e   :  { %v97_v11 = vpop.permute.xlu1 %96  ;;  %v95_v12 = vpop.permute.xlu0 %94  ;;  %705 = vmatprep.subr.bf16.mxu1 %v791_v28 }
  0x8f   :  { %v157_v17 = vsel %vm153_vm8, %v152_v15, %v97_v11  ;;  %v156_v18 = vsel %vm153_vm8, %v151_v16, %v95_v12 }
  0x91   :  { %707 = vmatpush1.bf16.msra.mxu1 %v706_v34 }
  0x92   :  { %v120_v13 = vpop.permute.xlu1 %119  ;;  %v118_v14 = vpop.permute.xlu0 %117  ;;  %708 = vmatprep.subr.bf16.mxu1 %v791_v28 }
  0x93   :  { %v162_v19 = vsel %vm158_vm9, %v157_v17, %v120_v13  ;;  %v161_v20 = vsel %vm158_vm9, %v156_v18, %v118_v14 }
  0x95   :  { %710 = vmatpush1.bf16.msra.mxu1 %v709_v37 }
  0x96   :  { %v143_v21 = vpop.permute.xlu1 %142  ;;  %v141_v22 = vpop.permute.xlu0 %140  ;;  %711 = vmatprep.subr.bf16.mxu1 %v791_v28 }
  0x97   :  { %v167_v23 = vsel %vm163_vm10, %v162_v19, %v143_v21  ;;  %v166_v24 = vsel %vm163_vm10, %v161_v20, %v141_v22 }
  0x98   :  { %679 = vmatprep.mubr.msk.f32.mxu0 %vm177_vm11, %v166_v24 }
  0x99   :  { %680 = vmatmul.mubr.msk.f32.gmra.mrb[2].mxu0 %vm177_vm11, %v167_v23  ;;  %713 = vmatpush1.bf16.msra.mxu1 %v712_v40 }
  0x9a   :  { %714 = vmatprep.subr.bf16.mxu1 %v791_v28 }
  0x9d   :  { %716 = vmatpush1.bf16.msra.mxu1 %v715_v43 }
  0x9e   :  { %717 = vmatprep.subr.bf16.mxu1 %v791_v28 }
  0xa1   :  { %719 = vmatpush1.bf16.msra.mxu1 %v718_v46 }
  0xa2   :  { %720 = vmatprep.subr.bf16.mxu1 %v791_v28 }
  0xa5   :  { %722 = vmatpush1.bf16.msra.mxu1 %v721_v49 }
  0xa6   :  { %723 = vmatprep.subr.bf16.mxu1 %v791_v28 }
  0xa9   :  { %725 = vmatpush1.bf16.msra.mxu1 %v724_v56 }
  0xaa   :  { %726 = vmatprep.subr.bf16.mxu1 %v791_v28 }
  0xad   :  { %728 = vmatpush1.bf16.msra.mxu1 %v727_v63 }
 0x15c   :  { %v678_v51 = vpop.f32.mrb[0].mxu0 }
 0x15d   :  { %v1006_v54 = vadd.f32 %v678_v51, %v648_v50  ;;  %v259_v55 = vpop.f32.mrb[1].mxu0 }
 0x15e   :  { %v1008_v57 = vadd.f32 %v648_v50, %v259_v55 }
 0x15f   :  { %v279_v58 = vmax.f32 %v1006_v54, 0.0 }
 0x160   :  { %v278_v59 = vmax.f32 %v1008_v57, 0.0 }
 0x161   :  { %v287_v62 = vrot.slane %v279_v58, 6 }
 0x162   :  { %v286_v0 = vrot.slane %v278_v59, 6 }
 0x163   :  { %v300_v1 = vsel %vm35_vm0, %v287_v62, 0.0 }
 0x164   :  { %v309_v2 = vrot.slane %v300_v1, 1  ;;  %v331_v3 = vrot.slane %v300_v1, 2  ;;  %v353_v6 = vrot.slane %v300_v1, 3  ;;  %v1025_v7 = vsel %vm35_vm0, %v286_v0, %v287_v62 }
 0x165   :  { %v1028_v8 = vsel %vm35_vm0, 0.0, %v286_v0  ;;  %v373_v5 = vrot.slane %v1025_v7, 4  ;;  %v329_v4 = vrot.slane %v1025_v7, 2  ;;  %v307_v9 = vrot.slane %v1025_v7, 1 }
 0x166   :  { %v372_v10 = vrot.slane %v1028_v8, 4  ;;  %v328_v11 = vrot.slane %v1028_v8, 2  ;;  %v306_v12 = vrot.slane %v1028_v8, 1  ;;  %v350_v13 = vrot.slane %v1028_v8, 3 }
 0x167   :  { %v332_v14 = vsel %vm79_vm1, %v329_v4, %v331_v3  ;;  %v310_v15 = vsel %vm56_vm2, %v307_v9, %v309_v2  ;;  %v351_v16 = vrot.slane %v1025_v7, 3  ;;  %v375_v17 = vrot.slane %v300_v1, 4 }
 0x168   :  { %v374_v18 = vsel %vm125_vm4, %v372_v10, %v373_v5  ;;  %v330_v19 = vsel %vm79_vm1, %v328_v11, %v329_v4  ;;  %v308_v20 = vsel %vm56_vm2, %v306_v12, %v307_v9 }
 0x169   :  { %655 = vmatprep.mubr.msk.f32.mxu1 %vm382_vm12, %v374_v18  ;;  %v752_v21 = vpack.i.bf16 %v332_v14, %v330_v19  ;;  %v747_v22 = vpack.i.bf16 %v310_v15, %v308_v20  ;;  %v352_v23 = vsel %vm102_vm3, %v350_v13, %v351_v16  ;;  %v354_v24 = vsel %vm102_vm3, %v351_v16, %v353_v6 }
 0x16a   :  { %v376_v25 = vsel %vm125_vm4, %v373_v5, %v375_v17  ;;  %v757_v30 = vpack.i.bf16 %v354_v24, %v352_v23 }
 0x16b   :  { %753 = vrot.lane.b32.xlu1 %v752_v21, %s792_s3  ;;  %748 = vrot.lane.b32.xlu0 %v747_v22, %s793_s8 }
 0x16c   :  { %v681_v26 = vpop.f32.mrb[2].mxu0 }
 0x16d   :  { %v1049_v27 = vadd.f32 %v681_v26, %v648_v50  ;;  %v269_v29 = vpop.f32.mrb[3].mxu0  ;;  %v545_v26 = vld [vmem:[%s1140_s5] sm:$0xff] }
 0x16e   :  { %v1051_v31 = vadd.f32 %v648_v50, %v269_v29  ;;  %v546_v29 = vld [vmem:[%s1140_s5 + $0x8] sm:$0xff] }
 0x16f   :  { %v281_v32 = vmax.f32 %v1049_v27, 0.0  ;;  %758 = vrot.lane.b32.xlu0 %v757_v30, %s794_s9  ;;  %v730_v30 = vpack.c.bf16 %v546_v29, %v545_v26 }
 0x170   :  { %v280_v33 = vmax.f32 %v1051_v31, 0.0 }
 0x171   :  { %v290_v34 = vrot.slane %v281_v32, 6  ;;  %731 = vmatpush3.bf16.msra.mxu0 %v730_v30 }
 0x172   :  { %v289_v35 = vrot.slane %v280_v33, 6  ;;  %732 = vmatprep.subr.bf16.mxu0 %v791_v28 }
 0x173   :  { %v301_v36 = vsel %vm35_vm0, %v290_v34, 0.0 }
 0x174   :  { %v291_v37 = vsel %vm35_vm0, %v289_v35, %v290_v34  ;;  %v299_v38 = vsel %vm35_vm0, 0.0, %v289_v35  ;;  %v314_v43 = vrot.slane %v301_v36, 1  ;;  %v358_v50 = vrot.slane %v301_v36, 3  ;;  %v547_v34 = vld [vmem:[%s1140_s5 + $0x10] sm:$0xff]  ;;  %v548_v35 = vld [vmem:[%s1140_s5 + $0x18] sm:$0xff] }
 0x175   :  { %v333_v39 = vrot.slane %v299_v38, 2  ;;  %v334_v40 = vrot.slane %v291_v37, 2  ;;  %v311_v41 = vrot.slane %v299_v38, 1  ;;  %v312_v42 = vrot.slane %v291_v37, 1 }
 0x176   :  { %v355_v46 = vrot.slane %v299_v38, 3  ;;  %v356_v47 = vrot.slane %v291_v37, 3  ;;  %v336_v51 = vrot.slane %v301_v36, 2  ;;  %v377_v9 = vrot.slane %v299_v38, 4 }
 0x177   :  { %v335_v44 = vsel %vm79_vm1, %v333_v39, %v334_v40  ;;  %v313_v45 = vsel %vm56_vm2, %v311_v41, %v312_v42  ;;  %v315_v48 = vsel %vm56_vm2, %v312_v42, %v314_v43  ;;  %v378_v10 = vrot.slane %v291_v37, 4 }
 0x178   :  { %342 = vrot.lane.b32.xlu0 %v335_v44, %s792_s3  ;;  %320 = vrot.lane.b32.xlu1 %v313_v45, %s793_s8  ;;  %v357_v49 = vsel %vm102_vm3, %v355_v46, %v356_v47  ;;  %v359_v52 = vsel %vm102_vm3, %v356_v47, %v358_v50  ;;  %v337_v53 = vsel %vm79_vm1, %v334_v40, %v336_v51  ;;  %v380_v16 = vrot.slane %v301_v36, 4 }
 0x179   :  { %v379_v12 = vsel %vm125_vm4, %v377_v9, %v378_v10  ;;  %v733_v36 = vpack.c.bf16 %v548_v35, %v547_v34  ;;  %vm558_vm0 = vcmask 1041409   ;;  %vm632_vm1 = vcmask 9216  }
 0x17a   :  { %v381_v20 = vsel %vm125_vm4, %v378_v10, %v380_v16 }
 0x17b   :  { %734 = vmatpush3.bf16.msra.mxu0 %v733_v36 }
 0x17c   :  { %322 = vrot.lane.b32.xlu0 %v315_v48, %s793_s8  ;;  %364 = vrot.lane.b32.xlu1 %v357_v49, %s794_s9 }
 0x180   :  { %366 = vrot.lane.b32.xlu0 %v359_v52, %s794_s9  ;;  %344 = vrot.lane.b32.xlu1 %v337_v53, %s792_s3 }
 0x1dd   :  { %v754_v55 = vpop.permute.xlu1 %753  ;;  %v749_v56 = vpop.permute.xlu0 %748 }
 0x1de   :  { %v750_v60 = vunpack.i.l.bf16 %v749_v56  ;;  %v755_v61 = vunpack.i.l.bf16 %v754_v55  ;;  %v751_v62 = vunpack.i.h.bf16 %v749_v56  ;;  %v756_v2 = vunpack.i.h.bf16 %v754_v55 }
 0x1e0   :  { %v383_v63 = vsel %vm382_vm12, %v1028_v8, %v750_v60  ;;  %v384_v4 = vsel %vm382_vm12, %v1025_v7, %v751_v62 }
 0x1e1   :  { %v759_v0 = vpop.permute.xlu0 %758  ;;  %v388_v3 = vsel %vm387_vm13, %v383_v63, %v755_v61  ;;  %v389_v8 = vsel %vm387_vm13, %v384_v4, %v756_v2 }
 0x1e2   :  { %v760_v1 = vunpack.i.l.bf16 %v759_v0  ;;  %v761_v6 = vunpack.i.h.bf16 %v759_v0 }
 0x1e4   :  { %v393_v5 = vsel %vm392_vm14, %v388_v3, %v760_v1  ;;  %v394_v11 = vsel %vm392_vm14, %v389_v8, %v761_v6 }
 0x1e5   :  { %497 = vmatmul.mubr.f32.vlgmr.msra.gmra.mrb[0].mxu1 %v393_v5 }
 0x1e6   :  { %656 = vmatprep.mubr.msk.f32.mxu1 %vm382_vm12, %v376_v25 }
 0x1e9   :  { %502 = vmatmul.mubr.f32.gmra.mrb[2].mxu1 %v394_v11 }
 0x1ea   :  { %657 = vmatprep.mubr.msk.f32.mxu1 %vm382_vm12, %v379_v12  ;;  %v321_v13 = vpop.permute.xlu1 %320  ;;  %v343_v14 = vpop.permute.xlu0 %342  ;;  %v659_v12 = vld [vmem:[%s1141_s6] ss:$0 sm:$0xff] }
 0x1eb   :  { %v385_v15 = vsel %vm382_vm12, %v299_v38, %v321_v13  ;;  %v654_v38 = vld [vmem:[%s1139_s4] ss:$0 sm:$0xff] }
 0x1ec   :  { %v390_v7 = vsel %vm387_vm13, %v385_v15, %v343_v14 }
 0x1ee   :  { %v365_v17 = vpop.permute.xlu1 %364  ;;  %v323_v18 = vpop.permute.xlu0 %322 }
 0x1ef   :  { %v395_v19 = vsel %vm392_vm14, %v390_v7, %v365_v17  ;;  %v386_v21 = vsel %vm382_vm12, %v291_v37, %v323_v18  ;;  %v796_v37 = vmov 0.0  }
 0x1f0   :  { %507 = vmatmul.mubr.f32.gmra.mrb[4].mxu1 %v395_v19  ;;  %690 = vmatprep.mubr.msk.f32.mxu0 %vm795_vm15, %v796_v37 }
 0x1f1   :  { %658 = vmatprep.mubr.msk.f32.mxu1 %vm382_vm12, %v381_v20 }
 0x1f2   :  { %v345_v22 = vpop.permute.xlu1 %344  ;;  %v367_v23 = vpop.permute.xlu0 %366 }
 0x1f3   :  { %v391_v24 = vsel %vm387_vm13, %v386_v21, %v345_v22 }
 0x1f4   :  { %v396_v25 = vsel %vm392_vm14, %v391_v24, %v367_v23 }
 0x1f5   :  { %512 = vmatmul.mubr.f32.gmra.mrb[6].mxu1 %v396_v25 }
 0x2b8   :  { %v498_v39 = vpop.f32.mrb[0].mxu1 }
 0x2b9   :  { %v499_v40 = vadd.f32 %v654_v38, %v498_v39  ;;  %v500_v41 = vpop.f32.mrb[1].mxu1 }
 0x2bb   :  { %v517_v42 = vadd.f32 %v499_v40, %v278_v59 }
 0x2bc   :  { %v503_v43 = vpop.f32.mrb[2].mxu1 }
 0x2bd   :  { %v504_v44 = vadd.f32 %v654_v38, %v503_v43  ;;  %v505_v45 = vpop.f32.mrb[3].mxu1  ;;  %v521_v46 = vmax.f32 %v517_v42, 0.0 }
 0x2bf   :  { %v518_v28 = vadd.f32 %v504_v44, %v279_v58  ;;  %v525_v48 = vsel %vm382_vm12, %v521_v46, 0.0 }
 0x2c1   :  { %v522_v47 = vmax.f32 %v518_v28, 0.0 }
 0x2c3   :  { %v526_v49 = vsel %vm382_vm12, %v522_v47, 0.0  ;;  %v508_v50 = vpop.f32.mrb[4].mxu1 }
 0x2c4   :  { %v527_v51 = vadd.f32 %v526_v49, %v525_v48  ;;  %v509_v52 = vadd.f32 %v654_v38, %v508_v50  ;;  %v510_v53 = vpop.f32.mrb[5].mxu1 }
 0x2c6   :  { %v528_v55 = vrot.slane %v527_v51, 4  ;;  %v519_v57 = vadd.f32 %v509_v52, %v280_v33 }
 0x2c8   :  { %v513_v59 = vpop.f32.mrb[6].mxu1  ;;  %v529_v61 = vadd.f32 %v528_v55, %v527_v51  ;;  %v523_v62 = vmax.f32 %v519_v57, 0.0 }
 0x2c9   :  { %v514_v56 = vadd.f32 %v654_v38, %v513_v59  ;;  %v515_v60 = vpop.f32.mrb[7].mxu1 }
 0x2ca   :  { %v530_v63 = vrot.slane %v529_v61, 2  ;;  %v534_v0 = vsel %vm382_vm12, %v523_v62, 0.0 }
 0x2cb   :  { %v520_v54 = vadd.f32 %v514_v56, %v281_v32 }
 0x2cc   :  { %v531_v3 = vadd.f32 %v530_v63, %v529_v61 }
 0x2cd   :  { %v524_v58 = vmax.f32 %v520_v54, 0.0 }
 0x2ce   :  { %v532_v31 = vrot.slane %v531_v3, 1 }
 0x2cf   :  { %v535_v1 = vsel %vm382_vm12, %v524_v58, 0.0 }
 0x2d0   :  { %v536_v2 = vadd.f32 %v535_v1, %v534_v0  ;;  %v533_v9 = vadd.f32 %v532_v31, %v531_v3 }
 0x2d2   :  { %v537_v6 = vrot.slane %v536_v2, 4  ;;  %v543_v11 = vmul.f32 0.0625, %v533_v9 }
 0x2d4   :  { %v538_v5 = vadd.f32 %v537_v6, %v536_v2 }
 0x2d6   :  { %v539_v33 = vrot.slane %v538_v5, 2 }
 0x2d8   :  { %v540_v4 = vadd.f32 %v539_v33, %v538_v5 }
 0x2da   :  { %v541_v10 = vrot.slane %v540_v4, 1 }
 0x2dc   :  { %v542_v8 = vadd.f32 %v541_v10, %v540_v4 }
 0x2de   :  { %v544_v27 = vmul.f32 0.0625, %v542_v8 }
 0x2e0   :  { %v559_v32 = vsel %vm558_vm0, %v544_v27, %v543_v11 }
 0x2e1   :  { %691 = vmatmul.mubr.msk.f32.vlgmr.msra.gmra.mrb[4].mxu0 %vm382_vm12, %v559_v32 }
 0x3b4   :  { %v628_v13 = vpop.f32.mrb[4].mxu0 }
 0x3b5   :  { %v629_v14 = vadd.f32 %v659_v12, %v628_v13  ;;  %v692_v15 = vpop.f32.mrb[5].mxu0 }
 0x3b7   :  { %633 = vst.msk [vmem:[#allocation2] sm:$0x3] %vm632_vm1, %v629_v14 }
 0x3b8   :  { %773 = shalt.err (!%p770_p4)
}
 0x3b9   :  { %s774_s23 = scalar_lea.hbm %s1142_s7, 32 }
 0x3ba   :  { %p775_p5 = scmp.ne.s32.totalorder %s1142_s7, %s774_s23  ;;  %p778_p6 = scmp.lt.u32.totalorder %s774_s23, %s1142_s7 }
 0x3bc   :  { %p780_p7 = pnand %p778_p6, %p775_p5 }
 0x3be   :  { %783 = shalt.err (!%p780_p7)
}
 0x3bf   :  { %643 = dma.vmem_to_hbm [thread:$0]  %s641_s19, 32, %s1142_s7, [#allocation3]  }
 0x3c0   :  { %784 = dma.done.wait [#allocation3], 32  }
 0x3c1   :  { %785 = vsyncadd [#allocation3], 4294967264 }
 0x3c2   :  { %647 = vsyncpa [#allocation3], 1 }

</bundles_post_ra>
